<compile_context>
chip_gen: v7x
topology: tpu7x:2x2x1
jax: 0.10.0
libtpu: 0.0.40
codegen_flags: <defaults>
</compile_context>

<pallas_src>
import math
from functools import partial

import numpy as np
import jax
import jax.numpy as jnp
from jax.experimental import pallas as pl
from jax.experimental.pallas import tpu as pltpu


def _round_up(v, m):
    return (v + m - 1) // m * m


def _cnn_flow_kernel(p_ref, x_ref, out_ref, ld_ref, *,
                     dim, dout, kernel_size, dilation, skip):
    """One batch tile: fused dilated conv + leaky-relu + rescale + skip + log-det."""
    k = kernel_size
    x0 = x_ref[:, 0:dout]                               # unshifted window (== tap 0)

    # Dilated 1-channel conv as k static shifted-window FMAs (VPU only).
    # Row i of p_ref is w[i] broadcast across lanes; row k is the bias.
    pre = p_ref[k:k + 1, :] + p_ref[0:1, :] * x0        # bias + w0 * x
    for i in range(1, k):
        off = i * dilation
        pre = pre + p_ref[i:i + 1, :] * x_ref[:, off:off + dout]

    neg_slope = jnp.float32(0.01)
    act = jnp.where(pre >= 0, pre, neg_slope * pre)             # leaky_relu
    grad = jnp.where(act >= 0, jnp.float32(1.0), neg_slope)     # its derivative

    scale_v = p_ref[k + 1:k + 2, :]                     # f(w0, lmbd)  (ones if rescale=False)
    gmul_v = p_ref[k + 2:k + 3, :]                      # scale * w0   (w0 if rescale=False)

    out = act * scale_v
    if skip:
        out = out + x0
    out_ref[...] = out.astype(out_ref.dtype)

    g = grad * gmul_v
    if skip:
        g = g + jnp.float32(1.0)
    # Mask lane-padding columns so they contribute 0 to the log-det.
    col = jax.lax.broadcasted_iota(jnp.int32, g.shape, 1)
    ld = jnp.where(col < dim, jnp.log(jnp.abs(g)), jnp.float32(0.0))
    ld_ref[...] = jnp.sum(ld, axis=-1, keepdims=True)


@partial(jax.jit, static_argnames=("kernel_size", "dilation", "rescale", "skip"))
def cnn_flow_layer(x, conv_w, conv_b, lmbd, *, kernel_size, dilation,
                   rescale=True, skip=True):
    """x: (B, dim) f32; conv_w: (kernel_size,); conv_b: scalar; lmbd: (dim,)."""
    B, dim = x.shape
    f32 = jnp.float32
    k = kernel_size
    max_off = (k - 1) * dilation

    Dout = _round_up(dim, 128)                  # lane-dense output width
    Xw = _round_up(Dout + max_off, 128)         # input window width (covers every tap's slice)
    Bp0 = _round_up(B, 8)
    tb_cap = max(8, (((4 << 20) // (Xw * 4)) // 8) * 8)   # keep x tile <= ~4 MiB
    TB = min(256, Bp0, tb_cap)                  # batch tile (multiple of 8)
    Bp = _round_up(Bp0, TB)

    x = x.astype(f32)
    w = conv_w.astype(f32).reshape(-1)
    w0 = w[0]
    bias = jnp.asarray(conv_b, f32).reshape(())

    # ---- parameter-only math, folded OUTSIDE the kernel (O(dim) work, once) ----
    if rescale:
        lm = lmbd.astype(f32)
        sp = jnp.maximum(lm, 0.0) + jnp.log1p(jnp.exp(-jnp.abs(lm)))   # softplus
        inv = jnp.where(w0 == 0.0, 0.0, 1.0 / w0)                      # safe 1/w0
        scale = jnp.where(w0 == 0.0, lm,
                          jnp.where(w0 > 0.0, -inv + sp, -inv - sp))
        gmul = scale * w0
    else:
        scale = jnp.ones((dim,), f32)
        gmul = jnp.full((dim,), w0, f32)

    pad_d = Dout - dim
    params = jnp.concatenate([
        jnp.broadcast_to(w[:, None], (k, Dout)),           # rows 0..k-1: conv taps
        jnp.full((1, Dout), bias, f32),                    # row k      : bias
        jnp.pad(scale, (0, pad_d))[None, :],               # row k+1    : scale
        jnp.pad(gmul, (0, pad_d))[None, :],                # row k+2    : scale*w0
    ], axis=0)                                             # (k+3, Dout), VMEM-resident

    xp = jnp.pad(x, ((0, Bp - B), (0, Xw - dim)))

    cost = pl.CostEstimate(
        flops=Bp * Dout * (2 * k + 10),
        transcendentals=Bp * Dout,
        bytes_accessed=4 * (Bp * Xw + Bp * Dout + Bp + (k + 3) * Dout),
    )

    out_p, ld_p = pl.pallas_call(
        partial(_cnn_flow_kernel, dim=dim, dout=Dout,
                kernel_size=k, dilation=dilation, skip=skip),
        out_shape=(jax.ShapeDtypeStruct((Bp, Dout), f32),
                   jax.ShapeDtypeStruct((Bp, 1), f32)),
        grid_spec=pltpu.PrefetchScalarGridSpec(
            num_scalar_prefetch=0,
            grid=(Bp // TB,),
            in_specs=[
                pl.BlockSpec((k + 3, Dout), lambda i: (0, 0)),   # params (resident)
                pl.BlockSpec((TB, Xw), lambda i: (i, 0)),        # x tile
            ],
            out_specs=(
                pl.BlockSpec((TB, Dout), lambda i: (i, 0)),
                pl.BlockSpec((TB, 1), lambda i: (i, 0)),
            ),
        ),
        compiler_params=pltpu.CompilerParams(
            dimension_semantics=("parallel",)),
        cost_estimate=cost,
    )(params, xp)

    return out_p[:B, :dim], ld_p[:B, 0]


def _reference(x, w, b, lmbd, kernel_size, dilation, rescale=True, skip=True):
    """Pure-JAX mirror of the PyTorch forward."""
    B, dim = x.shape
    pad = (kernel_size - 1) * dilation
    xp = jnp.pad(x, ((0, 0), (0, pad)))
    conv = b + sum(w[i] * xp[:, i * dilation: i * dilation + dim]
                   for i in range(kernel_size))
    neg = 0.01
    act = jnp.where(conv >= 0, conv, neg * conv)
    grad = jnp.where(act >= 0, 1.0, neg)
    w0 = w[0]
    sp = jnp.maximum(lmbd, 0.0) + jnp.log(1.0 + jnp.exp(-jnp.abs(lmbd)))
    scale = jnp.where(w0 == 0.0, lmbd,
                      jnp.where(w0 > 0.0, -1.0 / w0 + sp, -1.0 / w0 - sp))
    if rescale:
        out = act * scale[None, :]
        grad = grad * scale[None, :]
    else:
        out = act
    if skip:
        out = out + x
        logdet = jnp.log(jnp.abs(grad * w0 + 1.0)).sum(1)
    else:
        logdet = jnp.log(jnp.abs(grad * w0)).sum(1)
    return out, logdet


if __name__ == "__main__":
    # Small, module-consistent shapes.
    batch, dim = 8, 64
    kernel_size, dilation = 5, 2
    rescale, skip = True, True

    key = jax.random.PRNGKey(0)
    kx, kw, kb, kl = jax.random.split(key, 4)
    conv_w = jax.random.normal(kw, (kernel_size,), jnp.float32) / np.sqrt(kernel_size)
    conv_b = 0.1 * jax.random.normal(kb, (), jnp.float32)
    lmbd = jax.random.normal(kl, (dim,), jnp.float32)
    x = jax.random.normal(kx, (batch, dim), jnp.float32)

    out, logdet = cnn_flow_layer(x, conv_w, conv_b, lmbd,
                                 kernel_size=kernel_size, dilation=dilation,
                                 rescale=rescale, skip=skip)
    out, logdet = jax.block_until_ready((out, logdet))

    ref_out, ref_ld = _reference(x, conv_w, conv_b, lmbd, kernel_size, dilation,
                                 rescale=rescale, skip=skip)
    np.testing.assert_allclose(np.asarray(out), np.asarray(ref_out),
                               rtol=1e-4, atol=1e-4)
    np.testing.assert_allclose(np.asarray(logdet), np.asarray(ref_ld),
                               rtol=1e-4, atol=1e-4)

    # TODO(synk): test_mode=1 single-sample squeeze/unsqueeze path is subsumed by
    # always keeping a 2-D (B, dim) layout.
    print("KERNEL_OK")
</pallas_src>

<mosaic_0001>
module attributes {stable_mosaic.version = 11 : i64} {
  func.func @_cnn_flow_kernel(%arg0: i32, %arg1: memref<8x128xf32, #tpu.memory_space<vmem>>, %arg2: memref<8x256xf32, #tpu.memory_space<vmem>>, %arg3: memref<8x128xf32, #tpu.memory_space<vmem>>, %arg4: memref<8x1xf32, #tpu.memory_space<vmem>>) attributes {dimension_semantics = [#tpu.dimension_semantics<parallel>], iteration_bounds = array<i64: 1>, scalar_prefetch = 0 : i64, scratch_operands = 0 : i64, tpu.core_type = #tpu.core_type<tc>, window_params = [{pipeline_mode = #tpu.pipeline_mode<synchronous>, transform_indices = @transform_0, window_bounds = array<i64: 8, 128>}, {transform_indices = @transform_1, window_bounds = array<i64: 8, 256>}, {transform_indices = @transform_2, window_bounds = array<i64: 8, 128>}, {transform_indices = @transform_3, window_bounds = array<i64: 8, 1>}]} {
    %c0 = arith.constant 0 : index
    %c0_0 = arith.constant 0 : index
    %0 = vector.load %arg2[%c0, %c0_0] : memref<8x256xf32, #tpu.memory_space<vmem>>, vector<8x128xf32>
    %c5 = arith.constant 5 : index
    %c0_1 = arith.constant 0 : index
    %1 = vector.load %arg1[%c5, %c0_1] : memref<8x128xf32, #tpu.memory_space<vmem>>, vector<1x128xf32>
    %c0_2 = arith.constant 0 : index
    %c0_3 = arith.constant 0 : index
    %2 = vector.load %arg1[%c0_2, %c0_3] : memref<8x128xf32, #tpu.memory_space<vmem>>, vector<1x128xf32>
    %3 = vector.broadcast %2 : vector<1x128xf32> to vector<8x128xf32>
    %4 = arith.mulf %3, %0 : vector<8x128xf32>
    %5 = vector.broadcast %1 : vector<1x128xf32> to vector<8x128xf32>
    %6 = arith.addf %5, %4 : vector<8x128xf32>
    %c1 = arith.constant 1 : index
    %c0_4 = arith.constant 0 : index
    %7 = vector.load %arg1[%c1, %c0_4] : memref<8x128xf32, #tpu.memory_space<vmem>>, vector<1x128xf32>
    %c0_5 = arith.constant 0 : index
    %c2 = arith.constant 2 : index
    %8 = vector.load %arg2[%c0_5, %c2] : memref<8x256xf32, #tpu.memory_space<vmem>>, vector<8x128xf32>
    %9 = vector.broadcast %7 : vector<1x128xf32> to vector<8x128xf32>
    %10 = arith.mulf %9, %8 : vector<8x128xf32>
    %11 = arith.addf %6, %10 : vector<8x128xf32>
    %c2_6 = arith.constant 2 : index
    %c0_7 = arith.constant 0 : index
    %12 = vector.load %arg1[%c2_6, %c0_7] : memref<8x128xf32, #tpu.memory_space<vmem>>, vector<1x128xf32>
    %c0_8 = arith.constant 0 : index
    %c4 = arith.constant 4 : index
    %13 = vector.load %arg2[%c0_8, %c4] : memref<8x256xf32, #tpu.memory_space<vmem>>, vector<8x128xf32>
    %14 = vector.broadcast %12 : vector<1x128xf32> to vector<8x128xf32>
    %15 = arith.mulf %14, %13 : vector<8x128xf32>
    %16 = arith.addf %11, %15 : vector<8x128xf32>
    %c3 = arith.constant 3 : index
    %c0_9 = arith.constant 0 : index
    %17 = vector.load %arg1[%c3, %c0_9] : memref<8x128xf32, #tpu.memory_space<vmem>>, vector<1x128xf32>
    %c0_10 = arith.constant 0 : index
    %c6 = arith.constant 6 : index
    %18 = vector.load %arg2[%c0_10, %c6] : memref<8x256xf32, #tpu.memory_space<vmem>>, vector<8x128xf32>
    %19 = vector.broadcast %17 : vector<1x128xf32> to vector<8x128xf32>
    %20 = arith.mulf %19, %18 : vector<8x128xf32>
    %21 = arith.addf %16, %20 : vector<8x128xf32>
    %c4_11 = arith.constant 4 : index
    %c0_12 = arith.constant 0 : index
    %22 = vector.load %arg1[%c4_11, %c0_12] : memref<8x128xf32, #tpu.memory_space<vmem>>, vector<1x128xf32>
    %c0_13 = arith.constant 0 : index
    %c8 = arith.constant 8 : index
    %23 = vector.load %arg2[%c0_13, %c8] : memref<8x256xf32, #tpu.memory_space<vmem>>, vector<8x128xf32>
    %24 = vector.broadcast %22 : vector<1x128xf32> to vector<8x128xf32>
    %25 = arith.mulf %24, %23 : vector<8x128xf32>
    %26 = arith.addf %21, %25 : vector<8x128xf32>
    %cst = arith.constant 0.000000e+00 : f32
    %27 = vector.broadcast %cst : f32 to vector<8x128xf32>
    %28 = arith.cmpf oge, %26, %27 : vector<8x128xf32>
    %cst_14 = arith.constant 0.00999999977 : f32
    %29 = vector.broadcast %cst_14 : f32 to vector<8x128xf32>
    %30 = arith.mulf %29, %26 : vector<8x128xf32>
    %31 = arith.select %28, %26, %30 : vector<8x128xi1>, vector<8x128xf32>
    %cst_15 = arith.constant 0.000000e+00 : f32
    %32 = vector.broadcast %cst_15 : f32 to vector<8x128xf32>
    %33 = arith.cmpf oge, %31, %32 : vector<8x128xf32>
    %cst_16 = arith.constant 1.000000e+00 : f32
    %cst_17 = arith.constant 0.00999999977 : f32
    %34 = vector.broadcast %cst_16 : f32 to vector<8x128xf32>
    %35 = vector.broadcast %cst_17 : f32 to vector<8x128xf32>
    %36 = arith.select %33, %34, %35 : vector<8x128xi1>, vector<8x128xf32>
    %c6_18 = arith.constant 6 : index
    %c0_19 = arith.constant 0 : index
    %37 = vector.load %arg1[%c6_18, %c0_19] : memref<8x128xf32, #tpu.memory_space<vmem>>, vector<1x128xf32>
    %c7 = arith.constant 7 : index
    %c0_20 = arith.constant 0 : index
    %38 = vector.load %arg1[%c7, %c0_20] : memref<8x128xf32, #tpu.memory_space<vmem>>, vector<1x128xf32>
    %39 = vector.broadcast %37 : vector<1x128xf32> to vector<8x128xf32>
    %40 = arith.mulf %31, %39 : vector<8x128xf32>
    %41 = arith.addf %40, %0 : vector<8x128xf32>
    %c0_21 = arith.constant 0 : index
    %c0_22 = arith.constant 0 : index
    %42 = vector.load %arg3[%c0_21, %c0_22] : memref<8x128xf32, #tpu.memory_space<vmem>>, vector<8x128xf32>
    tpu.vector_store %arg3[%c0_21, %c0_22], %41 {strides = array<i32>} : memref<8x128xf32, #tpu.memory_space<vmem>>, vector<8x128xf32>,
    %43 = vector.broadcast %38 : vector<1x128xf32> to vector<8x128xf32>
    %44 = arith.mulf %36, %43 : vector<8x128xf32>
    %cst_23 = arith.constant 1.000000e+00 : f32
    %45 = vector.broadcast %cst_23 : f32 to vector<8x128xf32>
    %46 = arith.addf %44, %45 : vector<8x128xf32>
    %47 = tpu.iota {dimensions = array<i32: 1>} : vector<8x128xi32>
    %c64_i32 = arith.constant 64 : i32
    %48 = vector.broadcast %c64_i32 : i32 to vector<8x128xi32>
    %49 = arith.cmpi slt, %47, %48 : vector<8x128xi32>
    %50 = math.absf %46 : vector<8x128xf32>
    %51 = math.log %50 : vector<8x128xf32>
    %cst_24 = arith.constant 0.000000e+00 : f32
    %52 = vector.broadcast %cst_24 : f32 to vector<8x128xf32>
    %53 = arith.select %49, %51, %52 : vector<8x128xi1>, vector<8x128xf32>
    %cst_25 = arith.constant dense<0.000000e+00> : vector<8xf32>
    %54 = vector.multi_reduction <add>, %53, %cst_25 [1] : vector<8x128xf32> to vector<8xf32>
    %55 = vector.shape_cast %54 : vector<8xf32> to vector<8x1xf32>
    %c0_26 = arith.constant 0 : index
    %c0_27 = arith.constant 0 : index
    %56 = vector.load %arg4[%c0_26, %c0_27] : memref<8x1xf32, #tpu.memory_space<vmem>>, vector<8x1xf32>
    tpu.vector_store %arg4[%c0_26, %c0_27], %55 {strides = array<i32>} : memref<8x1xf32, #tpu.memory_space<vmem>>, vector<8x1xf32>,
    return
  }
  func.func @transform_0(%arg0: i32) -> (i32, i32) {
    %c0_i32 = arith.constant 0 : i32
    %c0_i32_0 = arith.constant 0 : i32
    %c0_i32_1 = arith.constant 0 : i32
    return %c0_i32, %c0_i32_0 : i32, i32
  }
  func.func @transform_1(%arg0: i32) -> (i32, i32) {
    %c0_i32 = arith.constant 0 : i32
    %c0_i32_0 = arith.constant 0 : i32
    return %arg0, %c0_i32 : i32, i32
  }
  func.func @transform_2(%arg0: i32) -> (i32, i32) {
    %c0_i32 = arith.constant 0 : i32
    %c0_i32_0 = arith.constant 0 : i32
    return %arg0, %c0_i32 : i32, i32
  }
  func.func @transform_3(%arg0: i32) -> (i32, i32) {
    %c0_i32 = arith.constant 0 : i32
    %c0_i32_0 = arith.constant 0 : i32
    return %arg0, %c0_i32 : i32, i32
  }
}

</mosaic_0001>

<bundles_post_ra>
// kernel: cnn_flow_layer.1
= control target key start
LH: loop header
LB: loop body
LE: loop exit
PB: predicated region body
PF: predicated region fallthrough
CT: control target
= control target key end

     0   :  { %s176_s14 = smov 124   ;;  %s177_s15 = smov 126   ;;  %s247_s0 = inlined_call_operand.vmem [shape: f32[8,128], index: 0, kind: input, shape index: {}]   ;;  %s248_s1 = inlined_call_operand.vmem [shape: f32[8,256], index: 1, kind: input, shape index: {}]   ;;  %s249_s2 = inlined_call_operand.hbm [shape: f32[8,128], index: 2, kind: output, shape index: {0}]   ;;  %s250_s3 = inlined_call_operand.vmem [shape: f32[8,1], index: 3, kind: output, shape index: {1}]  }
   0x1   :  { %v28_v0 = vld [vmem:[%s248_s1] sm:$0xff]  ;;  %v29_v1 = vld [vmem:[%s248_s1 + $0x8] sm:$0xff] }
   0x2   :  { %50 = vrot.lane.b32.xlu1 %v28_v0, %s176_s14  ;;  %36 = vrot.lane.b32.xlu0 %v28_v0, %s177_s15 }
   0x3   :  { %9 = vsyncpa [#allocation3], 0  ;;  %s178_s18 = smov 122   ;;  %s179_s19 = smov 120   ;;  %v136_v2 = vld [vmem:[%s247_s0] ss:$0 sm:$0xff]  ;;  %v107_v41 = vlaneseq }
   0x4   :  { %v21_v5 = vmul.f32 %v136_v2, %v28_v0  ;;  %v137_v6 = vld [vmem:[%s247_s0 + $0x5] ss:$0 sm:$0xff]  ;;  %vm54_vm0 = vcmask 1014784   ;;  %vm40_vm1 = vcmask 1031168   ;;  %v138_v7 = vld [vmem:[%s247_s0 + $0x1] ss:$0 sm:$0xff] }
   0x5   :  { %v139_v11 = vld [vmem:[%s247_s0 + $0x2] ss:$0 sm:$0xff]  ;;  %vm68_vm2 = vcmask 998400   ;;  %v140_v15 = vld [vmem:[%s247_s0 + $0x3] ss:$0 sm:$0xff]  ;;  %vm82_vm3 = vcmask 982016  }
   0x6   :  { %52 = vrot.lane.b32.xlu1 %v29_v1, %s176_s14  ;;  %38 = vrot.lane.b32.xlu0 %v29_v1, %s177_s15  ;;  %v26_v10 = vadd.f32 %v137_v6, %v21_v5  ;;  %v141_v23 = vld [vmem:[%s247_s0 + $0x4] ss:$0 sm:$0xff]  ;;  %v142_v31 = vld [vmem:[%s247_s0 + $0x6] ss:$0 sm:$0xff]  ;;  %v180_v35 = vmov 0.01  }
   0x7   :  { %v143_v33 = vld [vmem:[%s247_s0 + $0x7] ss:$0 sm:$0xff]  ;;  %v108_v42 = vand.u32 127, %v107_v41  ;;  %s181_s8 = smov [#allocation2]  }
   0x8   :  { %s124_s9 = sshll.u32 %s181_s8, 4  ;;  %s125_s9 = int_to_ptr.vmem [resolvable:$true] %s124_s9 }
   0x9   :  { %vm109_vm6 = vcmp.lt.s32.totalorder %v108_v42, 64  ;;  %s152_s0 = scalar_lea.vmem %s125_s9, 128  ;;  %p157_p1 = scmp.lt.s32.totalorder %s125_s9, %s125_s9 }
   0xa   :  { %66 = vrot.lane.b32.xlu1 %v29_v1, %s178_s18  ;;  %64 = vrot.lane.b32.xlu0 %v28_v0, %s178_s18  ;;  %p153_p0 = scmp.ne.s32.totalorder %s125_s9, %s152_s0  ;;  %p158_p2 = scmp.lt.s32.totalorder %s152_s0, %s152_s0 }
   0xc   :  { %p159_p3 = por %p158_p2, %p157_p1 }
   0xe   :  { %80 = vrot.lane.b32.xlu1 %v29_v1, %s179_s19  ;;  %78 = vrot.lane.b32.xlu0 %v28_v0, %s179_s19  ;;  %p160_p4 = pnand %p159_p3, %p153_p0 }
  0x74   :  { %v51_v3 = vpop.permute.xlu1 %50  ;;  %v37_v4 = vpop.permute.xlu0 %36 }
  0x78   :  { %v53_v8 = vpop.permute.xlu1 %52  ;;  %v39_v9 = vpop.permute.xlu0 %38 }
  0x79   :  { %v55_v12 = vsel %vm54_vm0, %v51_v3, %v53_v8  ;;  %v41_v13 = vsel %vm40_vm1, %v37_v4, %v39_v9 }
  0x7a   :  { %v43_v14 = vmul.f32 %v138_v7, %v41_v13  ;;  %v57_v16 = vmul.f32 %v139_v11, %v55_v12 }
  0x7c   :  { %v44_v17 = vadd.f32 %v43_v14, %v26_v10  ;;  %v67_v18 = vpop.permute.xlu1 %66  ;;  %v65_v19 = vpop.permute.xlu0 %64 }
  0x7d   :  { %v69_v20 = vsel %vm68_vm2, %v65_v19, %v67_v18 }
  0x7e   :  { %v58_v21 = vadd.f32 %v57_v16, %v44_v17  ;;  %v71_v22 = vmul.f32 %v140_v15, %v69_v20 }
  0x80   :  { %v81_v24 = vpop.permute.xlu1 %80  ;;  %v79_v25 = vpop.permute.xlu0 %78  ;;  %v72_v27 = vadd.f32 %v71_v22, %v58_v21 }
  0x81   :  { %v83_v26 = vsel %vm82_vm3, %v79_v25, %v81_v24 }
  0x82   :  { %v85_v28 = vmul.f32 %v141_v23, %v83_v26 }
  0x84   :  { %v86_v29 = vadd.f32 %v85_v28, %v72_v27 }
  0x86   :  { %vm87_vm4 = vcmp.ge.f32.partialorder %v86_v29, 0.0  ;;  %v88_v30 = vmul.f32 0.01, %v86_v29 }
  0x88   :  { %v89_v32 = vsel %vm87_vm4, %v86_v29, %v88_v30 }
  0x89   :  { %vm90_vm5 = vcmp.ge.f32.partialorder %v89_v32, 0.0  ;;  %v98_v34 = vmul.f32 %v142_v31, %v89_v32 }
  0x8a   :  { %v91_v36 = vsel %vm90_vm5, 1.0, %v180_v35 }
  0x8b   :  { %v105_v37 = vmul.f32 %v143_v33, %v91_v36  ;;  %v99_v38 = vadd.f32 %v98_v34, %v28_v0 }
  0x8d   :  { %v106_v39 = vadd.f32 1.0, %v105_v37  ;;  %100 = vst [vmem:[#allocation2] sm:$0xff] %v99_v38 }
  0x8f   :  { %v110_v40 = vand.u32 2147483647, %v106_v39 }
  0x91   :  { %150 = vlog2.f32 %v110_v40 }
  0x9b   :  { %v151_v43 = vpop.eup %150 }
  0x9c   :  { %v112_v44 = vmul.f32 0.6931472, %v151_v43 }
  0x9e   :  { %v113_v45 = vsel %vm109_vm6, %v112_v44, 0.0 }
  0x9f   :  { %114 = vadd.xlane.f32.xlu0 %v113_v45 }
  0xa0   :  { %163 = shalt.err (!%p160_p4)
}
  0xa1   :  { %s164_s12 = scalar_lea.hbm %s249_s2, 128 }
  0xa2   :  { %p165_p5 = scmp.ne.s32.totalorder %s249_s2, %s164_s12  ;;  %p168_p6 = scmp.lt.u32.totalorder %s164_s12, %s249_s2 }
  0xa4   :  { %p170_p7 = pnand %p168_p6, %p165_p5 }
  0xa6   :  { %173 = shalt.err (!%p170_p7)
}
  0xa7   :  { %127 = dma.vmem_to_hbm [thread:$0]  %s125_s9, 128, %s249_s2, [#allocation3]   ;;  %vm116_vm7 = vcmask 7168  }
 0x12c   :  { %v115_v46 = vpop.xlane.xlu0 %114 }
 0x12d   :  { %117 = vst.msk [vmem:[%s250_s3] sm:$0xff] %vm116_vm7, %v115_v46 }
 0x12e   :  { %174 = dma.done.wait [#allocation3], 128  }
 0x12f   :  { %175 = vsyncadd [#allocation3], 4294967168 }
 0x130   :  { %135 = vsyncpa [#allocation3], 1 }

</bundles_post_ra>
